<compile_context>
chip_gen: v7x
topology: tpu7x:2x2x1
jax: 0.10.0
libtpu: 0.0.40
codegen_flags: <defaults>
</compile_context>

<pallas_src>
import numpy as np
import jax
import jax.numpy as jnp
from jax.experimental import pallas as pl
from jax.experimental.pallas import tpu as pltpu


# --------------------------------------------------------------------------------------
# Pallas kernel: one (n, s-tile) block of the 1x1x1 conv
# --------------------------------------------------------------------------------------
def _conv1x1_kernel(x_ref, w_ref, b_ref, o_ref):
    """x_ref: (Cin, TS)   w_ref: (Cout, Cin)   b_ref: (Cout, 1)   o_ref: (Cout, TS)."""
    o_ref[...] = (
        jnp.dot(w_ref[...], x_ref[...], preferred_element_type=jnp.float32)
        + b_ref[...]
    )


def _pick_tile_s(S, target=2048):
    """Largest multiple-of-128 divisor of S that is <= target (else smallest, else S)."""
    candidates = [d for d in range(128, S + 1, 128) if S % d == 0]
    if not candidates:
        return S  # fall back to a single full-extent block (allowed by BlockSpec rules)
    under = [d for d in candidates if d <= target]
    return max(under) if under else min(candidates)


# --------------------------------------------------------------------------------------
# Forward pass (wrapper)
# --------------------------------------------------------------------------------------
def out_block_forward(x, weight, bias, *, tile_s=2048):
    """x: (N, Cin, D, H, W); weight: (Cout, Cin, 1, 1, 1); bias: (Cout,). NCDHW out."""
    N, Cin, D, H, W = x.shape
    Cout = weight.shape[0]
    S = D * H * W

    x2 = x.astype(jnp.float32).reshape(N, Cin, S)            # free view, no transpose
    w2 = weight.astype(jnp.float32).reshape(Cout, Cin)
    b2 = bias.astype(jnp.float32).reshape(Cout, 1)

    TS = _pick_tile_s(S, tile_s)
    grid = (N, S // TS)

    out = pl.pallas_call(
        _conv1x1_kernel,
        out_shape=jax.ShapeDtypeStruct((N, Cout, S), jnp.float32),
        grid=grid,
        in_specs=[
            pl.BlockSpec((None, Cin, TS), lambda n, s: (n, 0, s)),   # x tile
            pl.BlockSpec((Cout, Cin), lambda n, s: (0, 0)),          # weight (VMEM-resident)
            pl.BlockSpec((Cout, 1), lambda n, s: (0, 0)),            # bias   (VMEM-resident)
        ],
        out_specs=pl.BlockSpec((None, Cout, TS), lambda n, s: (n, 0, s)),
        compiler_params=pltpu.CompilerParams(
            dimension_semantics=("parallel", "parallel")),
    )(x2, w2, b2)

    return out.reshape(N, Cout, D, H, W)


# --------------------------------------------------------------------------------------
# Independent numpy reference (straight from the PyTorch definition)
# --------------------------------------------------------------------------------------
def _reference_forward(x, weight, bias):
    x = np.asarray(x, np.float64)
    N, Cin, D, H, W = x.shape
    Cout = weight.shape[0]
    w = np.asarray(weight, np.float64).reshape(Cout, Cin)
    b = np.asarray(bias, np.float64)
    out = np.einsum('oc,ncdhw->nodhw', w, x) + b[None, :, None, None, None]
    return out


# --------------------------------------------------------------------------------------
if __name__ == "__main__":
    key = jax.random.PRNGKey(0)
    N, Cin, D, H, W = 2, 4, 16, 16, 16       # input NCDHW
    n_classes = 3

    k_w, k_b, k_x = jax.random.split(key, 3)
    weight = 0.3 * jax.random.normal(k_w, (n_classes, Cin, 1, 1, 1), jnp.float32)
    bias = 0.1 * jax.random.normal(k_b, (n_classes,), jnp.float32)
    x = jax.random.normal(k_x, (N, Cin, D, H, W), jnp.float32)

    fwd = jax.jit(out_block_forward)
    out = jax.block_until_ready(fwd(x, weight, bias))

    assert out.shape == (N, n_classes, D, H, W), out.shape

    ref = _reference_forward(x, weight, bias)
    if not np.allclose(np.asarray(out), ref, rtol=1e-4, atol=1e-5):
        max_err = float(np.max(np.abs(np.asarray(out) - ref)))
        raise AssertionError(f"mismatch vs reference, max abs err = {max_err}")

    print("KERNEL_OK")
</pallas_src>

<mosaic_0001>
module attributes {stable_mosaic.version = 11 : i64} {
  func.func @_conv1x1_kernel(%arg0: i32, %arg1: i32, %arg2: memref<1x4x2048xf32, #tpu.memory_space<vmem>>, %arg3: memref<3x4xf32, #tpu.memory_space<vmem>>, %arg4: memref<3x1xf32, #tpu.memory_space<vmem>>, %arg5: memref<1x3x2048xf32, #tpu.memory_space<vmem>>) attributes {dimension_semantics = [#tpu.dimension_semantics<parallel>, #tpu.dimension_semantics<parallel>], iteration_bounds = array<i64: 2, 2>, scalar_prefetch = 0 : i64, scratch_operands = 0 : i64, tpu.core_type = #tpu.core_type<tc>, window_params = [{transform_indices = @transform_0, window_bounds = array<i64: 1, 4, 2048>}, {pipeline_mode = #tpu.pipeline_mode<synchronous>, transform_indices = @transform_1, window_bounds = array<i64: 3, 4>}, {pipeline_mode = #tpu.pipeline_mode<synchronous>, transform_indices = @transform_2, window_bounds = array<i64: 3, 1>}, {transform_indices = @transform_3, window_bounds = array<i64: 1, 3, 2048>}]} {
    %c0 = arith.constant 0 : index
    %c0_0 = arith.constant 0 : index
    %0 = vector.load %arg3[%c0, %c0_0] : memref<3x4xf32, #tpu.memory_space<vmem>>, vector<3x4xf32>
    %c0_1 = arith.constant 0 : index
    %c0_2 = arith.constant 0 : index
    %c0_3 = arith.constant 0 : index
    %1 = vector.load %arg2[%c0_1, %c0_2, %c0_3] : memref<1x4x2048xf32, #tpu.memory_space<vmem>>, vector<1x4x2048xf32>
    %2 = vector.shape_cast %1 : vector<1x4x2048xf32> to vector<4x2048xf32>
    %cst = arith.constant dense<0.000000e+00> : vector<3x2048xf32>
    %3 = tpu.matmul %0, %2, %cst {dimension_numbers = #tpu.dot_dimension_numbers<[1], [0], [0], [1], [0, 0, 1, 1], [], []>} : vector<3x4xf32>, vector<4x2048xf32>, vector<3x2048xf32> -> vector<3x2048xf32>
    %c0_4 = arith.constant 0 : index
    %c0_5 = arith.constant 0 : index
    %4 = vector.load %arg4[%c0_4, %c0_5] : memref<3x1xf32, #tpu.memory_space<vmem>>, vector<3x1xf32>
    %5 = vector.broadcast %4 : vector<3x1xf32> to vector<3x2048xf32>
    %6 = arith.addf %3, %5 : vector<3x2048xf32>
    %c0_6 = arith.constant 0 : index
    %c0_7 = arith.constant 0 : index
    %c0_8 = arith.constant 0 : index
    %7 = vector.load %arg5[%c0_6, %c0_7, %c0_8] : memref<1x3x2048xf32, #tpu.memory_space<vmem>>, vector<1x3x2048xf32>
    %8 = vector.shape_cast %7 : vector<1x3x2048xf32> to vector<3x2048xf32>
    %9 = vector.shape_cast %6 : vector<3x2048xf32> to vector<1x3x2048xf32>
    tpu.vector_store %arg5[%c0_6, %c0_7, %c0_8], %9 {strides = array<i32>} : memref<1x3x2048xf32, #tpu.memory_space<vmem>>, vector<1x3x2048xf32>,
    return
  }
  func.func @transform_0(%arg0: i32, %arg1: i32) -> (i32, i32, i32) {
    %c0_i32 = arith.constant 0 : i32
    %c0_i32_0 = arith.constant 0 : i32
    return %arg0, %c0_i32, %arg1 : i32, i32, i32
  }
  func.func @transform_1(%arg0: i32, %arg1: i32) -> (i32, i32) {
    %c0_i32 = arith.constant 0 : i32
    %c0_i32_0 = arith.constant 0 : i32
    %c0_i32_1 = arith.constant 0 : i32
    return %c0_i32, %c0_i32_0 : i32, i32
  }
  func.func @transform_2(%arg0: i32, %arg1: i32) -> (i32, i32) {
    %c0_i32 = arith.constant 0 : i32
    %c0_i32_0 = arith.constant 0 : i32
    %c0_i32_1 = arith.constant 0 : i32
    return %c0_i32, %c0_i32_0 : i32, i32
  }
  func.func @transform_3(%arg0: i32, %arg1: i32) -> (i32, i32, i32) {
    %c0_i32 = arith.constant 0 : i32
    %c0_i32_0 = arith.constant 0 : i32
    return %arg0, %c0_i32, %arg1 : i32, i32, i32
  }
}

</mosaic_0001>

<bundles_post_ra>
// kernel: out_block_forward.1
= control target key start
LH: loop header
LB: loop body
LE: loop exit
PB: predicated region body
PF: predicated region fallthrough
CT: control target
= control target key end

     0   :  { %s1126_s12 = smov 0   ;;  %s1128_s13 = smov 0   ;;  %s1224_s0 = inlined_call_operand.vmem [shape: f32[2,4,4096], index: 0, kind: input, shape index: {}]   ;;  %s1225_s1 = inlined_call_operand.vmem [shape: f32[3,4], index: 1, kind: input, shape index: {}]   ;;  %s1226_s2 = inlined_call_operand.vmem [shape: f32[3,1], index: 2, kind: input, shape index: {}]   ;;  %s1227_s3 = inlined_call_operand.vmem [shape: f32[2,3,4096], index: 3, kind: output, shape index: {}]  }
   0x1   :  { %s1130_s14 = smov 0   ;;  %s1132_s15 = smov 0  }
   0x2   :  { %s1134_s16 = smov 0  }
   0x3 LB: > { %s22_s17 = sadd.s32 1, %s1094_s14  ;;  %s25_s18 = sadd.s32 1, %s1098_s15  ;;  %s1102_s16 = sphi %s1134_s16, %s13_s16   ;;  %s1098_s15 = sphi %s1132_s15, %s1231_s15   ;;  %s1094_s14 = sphi %s1130_s14, %s1230_s14   ;;  %s1090_s13 = sphi %s1128_s13, %s1229_s13   ;;  %s1086_s12 = sphi %s1126_s12, %s1228_s12  }
   0x4   : > { %p23_p0 = scmp.ge.s32.totalorder %s22_s17, 2  ;;  %p980_p1 = scmp.ge.s32.totalorder %s1102_s16, 1 }
   0x5   : > { %p158_p2 = scmp.lt.s32.totalorder %s1102_s16, 5 }
   0x6   : > { %s1233_s17 = smov (%p23_p0, %s22_s17), 0  ;;  %s1235_s18 = smov (!%p23_p0, %s25_s18), %s1098_s15 }
   0x7   : > { %p159_p3 = pnand %p980_p1, %p158_p2  ;;  %p27_p4 = scmp.ge.s32.totalorder %s1235_s18, 2 }
   0x8   : > { %s981_s19 = sshll.u32 (!%p159_p3), %s1086_s12, 4  ;;  %p191_p5 = scmp.lt.s32.totalorder (!%p159_p3), %s1090_s13, 1  ;;  %v1104_v0 = vmov (!%p159_p3), 0.0   ;;  %v219_v1 = vld [vmem:[%s1226_s2] sm:$0x7] (!%p159_p3)  ;;  %v1105_v2 = vmov (!%p159_p3), 0  }
   0x9   : > { %s1237_s18 = smov (%p27_p4, %s1235_s18), 0  ;;  %162 = sbr.rel (%p159_p3) target bundleno = 256 (0x100), region = 32 }
   0xa   : > { %p193_p6 = scmp.lt.s32.totalorder (!%p159_p3), %s981_s19, 31  ;;  %342 = vmatprep.mubr.f32.mxu0 (!%p159_p3), %v1104_v0  ;;  %413 = vmatprep.mubr.f32.mxu1 (!%p159_p3), %v1104_v0  ;;  %vm245_vm0 = vcmask (!%p159_p3), 1043456   ;;  %v210_v9 = vld [vmem:[%s1225_s1] sm:$0x7] (!%p159_p3)  ;;  %vm241_vm1 = vcmask (!%p159_p3), 31744  }
   0xb   : > { %1055 = vset.pattern.permute.xlu0 (!%p159_p3), %v1105_v2 }
   0xc   : > { %222 = vperm.xlu0 (!%p159_p3), %1055, %v219_v1  }
  0x10   : > { %s1239_s13 = smov (!%p191_p5, %s1090_s13), 1  ;;  %s1241_s19 = smov (!%p193_p6, %s981_s19), 31 }
  0x11   : > { %s982_s22 = sshll.u32 %s1239_s13, 5 }
  0x12   : > { %s1159_s23 = sadd.s32 %s982_s22, %s1241_s19 }
  0x13   : > { %s983_s24 = sshll.u32 %s1159_s23, 2 }
  0x14   : > { %s198_s27 = scalar_lea.vmem %s1224_s0, %s983_s24  ;;  %s1199_s5 = scalar_lea.vmem %s1227_s3, %s983_s24 }
  0x15   : > { %v211_v3 = vld [vmem:[%s198_s27] sm:$0xff]  ;;  %v212_v4 = vld [vmem:[%s198_s27 + $0x8] sm:$0xff]  ;;  %v213_v5 = vld [vmem:[%s198_s27 + $0x10] sm:$0xff] }
  0x16   : > { %v233_v6 = vcombine.high %v211_v3, %v211_v3  ;;  %v234_v7 = vcombine.high %v212_v4, %v212_v4  ;;  %v214_v8 = vld [vmem:[%s198_s27 + $0x18] sm:$0xff]  ;;  %v235_v10 = vcombine.high %v213_v5, %v213_v5  ;;  %v215_v12 = vld [vmem:[%s198_s27 + $0x20] sm:$0xff]  ;;  %v216_v13 = vld [vmem:[%s198_s27 + $0x28] sm:$0xff] }
  0x17   : > { %v236_v11 = vcombine.high %v214_v8, %v214_v8  ;;  %v237_v14 = vcombine.high %v215_v12, %v215_v12  ;;  %v238_v15 = vcombine.high %v216_v13, %v216_v13  ;;  %v217_v16 = vld [vmem:[%s198_s27 + $0x30] sm:$0xff]  ;;  %v218_v17 = vld [vmem:[%s198_s27 + $0x38] sm:$0xff] }
  0x18   : > { %987 = vmatprep.subr.msk.mxu0 %vm245_vm0, %v233_v6  ;;  %990 = vmatprep.subr.msk.mxu1 %vm245_vm0, %v234_v7  ;;  %v239_v18 = vcombine.high %v217_v16, %v217_v16  ;;  %v240_v19 = vcombine.high %v218_v17, %v218_v17 }
  0x19   : > { %988 = vmatpush1.msk.msra.mxu0 %vm245_vm0, %v211_v3  ;;  %991 = vmatpush1.msk.msra.mxu1 %vm245_vm0, %v212_v4 }
  0x1a   : > { %989 = vmatmul.mubr.msk.f32.vlgmr.msra.gmra.mrb[0].mxu0 %vm241_vm1, %v210_v9  ;;  %992 = vmatmul.mubr.msk.f32.vlgmr.msra.gmra.mrb[0].mxu1 %vm241_vm1, %v210_v9 }
  0x1b   : > { %993 = vmatprep.subr.msk.mxu0 %vm245_vm0, %v235_v10  ;;  %996 = vmatprep.subr.msk.mxu1 %vm245_vm0, %v236_v11 }
  0x1c   : > { %994 = vmatpush1.msk.msra.mxu0 %vm245_vm0, %v213_v5  ;;  %997 = vmatpush1.msk.msra.mxu1 %vm245_vm0, %v214_v8 }
  0x1d   : > { %484 = vmatprep.mubr.f32.mxu0 %v1104_v0  ;;  %555 = vmatprep.mubr.f32.mxu1 %v1104_v0 }
  0x1e   : > { %995 = vmatmul.mubr.msk.f32.vlgmr.msra.gmra.mrb[2].mxu0 %vm241_vm1, %v210_v9  ;;  %998 = vmatmul.mubr.msk.f32.vlgmr.msra.gmra.mrb[2].mxu1 %vm241_vm1, %v210_v9 }
  0x1f   : > { %999 = vmatprep.subr.msk.mxu0 %vm245_vm0, %v237_v14  ;;  %1002 = vmatprep.subr.msk.mxu1 %vm245_vm0, %v238_v15 }
  0x20   : > { %1000 = vmatpush1.msk.msra.mxu0 %vm245_vm0, %v215_v12  ;;  %1003 = vmatpush1.msk.msra.mxu1 %vm245_vm0, %v216_v13 }
  0x21   : > { %626 = vmatprep.mubr.f32.mxu0 %v1104_v0  ;;  %697 = vmatprep.mubr.f32.mxu1 %v1104_v0 }
  0x22   : > { %1001 = vmatmul.mubr.msk.f32.vlgmr.msra.gmra.mrb[4].mxu0 %vm241_vm1, %v210_v9  ;;  %1004 = vmatmul.mubr.msk.f32.vlgmr.msra.gmra.mrb[4].mxu1 %vm241_vm1, %v210_v9 }
  0x23   : > { %1005 = vmatprep.subr.msk.mxu0 %vm245_vm0, %v239_v18  ;;  %1008 = vmatprep.subr.msk.mxu1 %vm245_vm0, %v240_v19 }
  0x24   : > { %1006 = vmatpush1.msk.msra.mxu0 %vm245_vm0, %v217_v16  ;;  %1009 = vmatpush1.msk.msra.mxu1 %vm245_vm0, %v218_v17 }
  0x25   : > { %768 = vmatprep.mubr.f32.mxu0 %v1104_v0  ;;  %839 = vmatprep.mubr.f32.mxu1 %v1104_v0 }
  0x26   : > { %1007 = vmatmul.mubr.msk.f32.vlgmr.msra.gmra.mrb[6].mxu0 %vm241_vm1, %v210_v9  ;;  %1010 = vmatmul.mubr.msk.f32.vlgmr.msra.gmra.mrb[6].mxu1 %vm241_vm1, %v210_v9 }
  0x8b   : > { %v223_v20 = vpop.permute.xlu0 %222 }
  0xed   : > { %v344_v21 = vpop.f32.mrb[0].mxu0  ;;  %v415_v22 = vpop.f32.mrb[0].mxu1 }
  0xee   : > { %v345_v23 = vadd.f32 %v344_v21, %v223_v20  ;;  %v346_v24 = vpop.f32.mrb[1].mxu0  ;;  %v416_v25 = vadd.f32 %v415_v22, %v223_v20  ;;  %v417_v26 = vpop.f32.mrb[1].mxu1 }
  0xef   : > { %v347_v27 = vadd.f32 %v346_v24, %v223_v20  ;;  %v418_v28 = vadd.f32 %v417_v26, %v223_v20 }
  0xf1   : > { %v862_v29 = vcombine.low %v345_v23, %v347_v27  ;;  %v863_v30 = vcombine.low %v416_v25, %v418_v28  ;;  %v486_v31 = vpop.f32.mrb[2].mxu0  ;;  %v557_v32 = vpop.f32.mrb[2].mxu1 }
  0xf2   : > { %v487_v33 = vadd.f32 %v486_v31, %v223_v20  ;;  %v558_v34 = vadd.f32 %v557_v32, %v223_v20  ;;  %v488_v35 = vpop.f32.mrb[3].mxu0  ;;  %v559_v36 = vpop.f32.mrb[3].mxu1 }
  0xf3   : > { %878 = vst [vmem:[%s1199_s5] sm:$0x77] %v862_v29  ;;  %879 = vst [vmem:[%s1199_s5 + $0x8] sm:$0x77] %v863_v30  ;;  %v489_v37 = vadd.f32 %v488_v35, %v223_v20  ;;  %v560_v38 = vadd.f32 %v559_v36, %v223_v20 }
  0xf5   : > { %v864_v39 = vcombine.low %v487_v33, %v489_v37  ;;  %v865_v40 = vcombine.low %v558_v34, %v560_v38  ;;  %v628_v41 = vpop.f32.mrb[4].mxu0  ;;  %v699_v42 = vpop.f32.mrb[4].mxu1 }
  0xf6   : > { %v629_v43 = vadd.f32 %v628_v41, %v223_v20  ;;  %v700_v44 = vadd.f32 %v699_v42, %v223_v20  ;;  %v630_v45 = vpop.f32.mrb[5].mxu0  ;;  %v701_v46 = vpop.f32.mrb[5].mxu1 }
  0xf7   : > { %880 = vst [vmem:[%s1199_s5 + $0x10] sm:$0x77] %v864_v39  ;;  %881 = vst [vmem:[%s1199_s5 + $0x18] sm:$0x77] %v865_v40  ;;  %v631_v47 = vadd.f32 %v630_v45, %v223_v20  ;;  %v702_v48 = vadd.f32 %v701_v46, %v223_v20 }
  0xf9   : > { %v866_v49 = vcombine.low %v629_v43, %v631_v47  ;;  %v867_v50 = vcombine.low %v700_v44, %v702_v48  ;;  %v770_v51 = vpop.f32.mrb[6].mxu0  ;;  %v841_v52 = vpop.f32.mrb[6].mxu1 }
  0xfa   : > { %v771_v53 = vadd.f32 %v770_v51, %v223_v20  ;;  %v842_v54 = vadd.f32 %v841_v52, %v223_v20  ;;  %v772_v55 = vpop.f32.mrb[7].mxu0  ;;  %v843_v56 = vpop.f32.mrb[7].mxu1 }
  0xfb   : > { %882 = vst [vmem:[%s1199_s5 + $0x20] sm:$0x77] %v866_v49  ;;  %883 = vst [vmem:[%s1199_s5 + $0x28] sm:$0x77] %v867_v50  ;;  %v773_v57 = vadd.f32 %v772_v55, %v223_v20  ;;  %v844_v58 = vadd.f32 %v843_v56, %v223_v20 }
  0xfd   : > { %v868_v59 = vcombine.low %v771_v53, %v773_v57  ;;  %v869_v60 = vcombine.low %v842_v54, %v844_v58 }
  0xff   : > { %884 = vst [vmem:[%s1199_s5 + $0x30] sm:$0x77] %v868_v59  ;;  %885 = vst [vmem:[%s1199_s5 + $0x38] sm:$0x77] %v869_v60 }
 0x100 PF: > { %s13_s16 = sadd.s32 1, %s1102_s16   ;;  %s1228_s12 = smov %s1094_s14 }
 0x101   : > { %p10_p7 = scmp.ge.s32.totalorder %s13_s16, 6   ;;  %s1229_s13 = smov %s1098_s15 }
 0x102   : > { %s1230_s14 = smov %s1233_s17  ;;  %s1231_s15 = smov %s1237_s18 }
 0x103   :  { %12 = sbr.rel (!%p10_p7) target bundleno = 3 (0x3), region = 62 }

</bundles_post_ra>
